<compile_context>
chip_gen: v7x
topology: tpu7x:2x2x1
jax: 0.10.0
libtpu: 0.0.40
codegen_flags: <defaults>
</compile_context>

<pallas_src>
import functools

import jax
import jax.numpy as jnp
from jax.experimental import pallas as pl
from jax.experimental.pallas import tpu as pltpu

EPS = 1e-5
_VMEM_LIMIT = 48 * 1024 * 1024  # > v5e 16MiB scoped default, < v7x 64MiB physical


def _pick_block(dim, target, align):
    """Largest block <= target that divides dim and is a multiple of align.

    Falls back to the full dim (always a legal block size) -> no padding ever."""
    if dim <= target:
        return dim
    if dim % align == 0:
        for blk in range(target - target % align, align - 1, -align):
            if dim % blk == 0:
                return blk
    return dim


# ----------------------------- Pallas kernels ------------------------------

def _matmul_plain_kernel(a_ref, b_ref, o_ref):
    o_ref[...] = jnp.dot(a_ref[...], b_ref[...],
                         preferred_element_type=jnp.float32)


def _matmul_bias_kernel(a_ref, b_ref, bias_ref, o_ref):
    acc = jnp.dot(a_ref[...], b_ref[...], preferred_element_type=jnp.float32)
    o_ref[...] = acc + bias_ref[...]


def _conv_tap_kernel(x_ref, w_ref, o_ref, *, shifts, m_rows):
    """KxK stride-1 conv on a flattened padded activation held in VMEM.

    x_ref: (m_rows + max_shift, Cin) bf16, w_ref: (T, Cin, co_blk) bf16,
    o_ref: (m_rows, co_blk) f32.  Each tap t is a shifted contiguous row
    window of x_ref matmul'd with w_ref[t]; accumulation stays in f32 VMEM."""
    for t, s in enumerate(shifts):
        part = jnp.dot(x_ref[s:s + m_rows, :], w_ref[t],
                       preferred_element_type=jnp.float32)
        if t == 0:
            o_ref[...] = part
        else:
            o_ref[...] += part


def _bn_kernel(x_ref, g_ref, b_ref, o_ref, *, relu):
    """Fused training-mode BN: batch stats (f32) + affine (+ReLU), one pass."""
    x = x_ref[...]
    mean = jnp.mean(x, axis=0, keepdims=True)
    var = jnp.mean(jnp.square(x - mean), axis=0, keepdims=True)
    scale = g_ref[...] * jax.lax.rsqrt(var + EPS)
    shift = b_ref[...] - mean * scale
    y = x * scale + shift
    if relu:
        y = jnp.maximum(y, 0.0)
    o_ref[...] = y.astype(o_ref.dtype)


def _bn_residual_kernel(x_ref, g_ref, b_ref, r_ref, o_ref):
    """Fused BN + residual add + ReLU (bottleneck tail)."""
    x = x_ref[...]
    mean = jnp.mean(x, axis=0, keepdims=True)
    var = jnp.mean(jnp.square(x - mean), axis=0, keepdims=True)
    scale = g_ref[...] * jax.lax.rsqrt(var + EPS)
    shift = b_ref[...] - mean * scale
    y = x * scale + shift + r_ref[...].astype(jnp.float32)
    o_ref[...] = jnp.maximum(y, 0.0).astype(o_ref.dtype)


def _maxpool_kernel(p_ref, o_ref):
    o_ref[...] = jnp.max(p_ref[...], axis=0)


# ------------------------------ call wrappers -------------------------------

def _matmul(a, b, bias=None):
    """(M,K)bf16 @ (K,N)bf16 -> (M,N)f32, K unblocked, no operand padding."""
    M, K = a.shape
    _, N = b.shape
    tm = _pick_block(M, 1024, 8)
    tn = _pick_block(N, 256, 128)
    in_specs = [pl.BlockSpec((tm, K), lambda i, j: (i, 0)),
                pl.BlockSpec((K, tn), lambda i, j: (0, j))]
    operands = [a, b]
    if bias is not None:
        in_specs.append(pl.BlockSpec((1, tn), lambda i, j: (0, j)))
        operands.append(bias.reshape(1, N).astype(jnp.float32))
        kernel = _matmul_bias_kernel
    else:
        kernel = _matmul_plain_kernel
    return pl.pallas_call(
        kernel,
        out_shape=jax.ShapeDtypeStruct((M, N), jnp.float32),
        grid_spec=pltpu.PrefetchScalarGridSpec(
            num_scalar_prefetch=0,
            grid=(M // tm, N // tn),
            in_specs=in_specs,
            out_specs=pl.BlockSpec((tm, tn), lambda i, j: (i, j))),
        compiler_params=pltpu.CompilerParams(
            dimension_semantics=("parallel", "parallel"),
            vmem_limit_bytes=_VMEM_LIMIT),
    )(*operands)


def _conv_s1_direct(x, w, padding):
    """KxK stride-1 conv without im2col (tap-sum over a flattened activation).

    Computes the conv on the full padded grid (small overhead) and crops."""
    N, H, W, Cin = x.shape
    KH, KW, _, Cout = w.shape
    OH = H + 2 * padding - KH + 1
    OW = W + 2 * padding - KW + 1
    Ha = H + 2 * padding + KH - 1
    Wa = W + 2 * padding + KW - 1
    xp = jnp.pad(x, ((0, 0),
                     (padding, padding + KH - 1),
                     (padding, padding + KW - 1),
                     (0, 0)))
    m_rows = N * Ha * Wa
    max_shift = (KH - 1) * Wa + (KW - 1)
    x3 = jnp.pad(xp.reshape(m_rows, Cin), ((0, max_shift), (0, 0)))
    shifts = tuple(ky * Wa + kx for ky in range(KH) for kx in range(KW))
    w3 = w.reshape(KH * KW, Cin, Cout)
    co_blk = 128 if (Cout % 128 == 0 and Cout > 128) else Cout

    Mx = x3.shape[0]
    T = KH * KW
    out_full = pl.pallas_call(
        functools.partial(_conv_tap_kernel, shifts=shifts, m_rows=m_rows),
        out_shape=jax.ShapeDtypeStruct((m_rows, Cout), jnp.float32),
        grid_spec=pltpu.PrefetchScalarGridSpec(
            num_scalar_prefetch=0,
            grid=(Cout // co_blk,),
            in_specs=[pl.BlockSpec((Mx, Cin), lambda j: (0, 0)),
                      pl.BlockSpec((T, Cin, co_blk), lambda j: (0, 0, j))],
            out_specs=pl.BlockSpec((m_rows, co_blk), lambda j: (0, j))),
        compiler_params=pltpu.CompilerParams(
            dimension_semantics=("parallel",),
            vmem_limit_bytes=_VMEM_LIMIT),
    )(x3, w3)
    return out_full.reshape(N, Ha, Wa, Cout)[:, :OH, :OW, :]


# ------------------------------ layer wrappers ------------------------------

@functools.partial(jax.jit, static_argnames=("stride", "padding"))
def conv2d(x, w, bias=None, *, stride=1, padding=0):
    """x: (N,H,W,Cin) bf16, w: (KH,KW,Cin,Cout) bf16 -> (N,OH,OW,Cout) f32."""
    N, H, W, _ = x.shape
    KH, KW, Cin, Cout = w.shape
    if KH == 1 and KW == 1:
        if stride != 1:
            x = x[:, ::stride, ::stride, :]
            N, H, W, _ = x.shape
        out = _matmul(x.reshape(N * H * W, Cin), w.reshape(Cin, Cout), bias)
        return out.reshape(N, H, W, Cout)
    if stride == 1:
        return _conv_s1_direct(x, w, padding)
    # K>1 strided convs (only conv1 7x7 s2 and the two downsampling 3x3 s2):
    # duplication after downsampling is small, so im2col + matmul is fine here.
    OH = (H + 2 * padding - KH) // stride + 1
    OW = (W + 2 * padding - KW) // stride + 1
    xp = jnp.pad(x, ((0, 0), (padding, padding), (padding, padding), (0, 0)))
    cols = [xp[:, ky:ky + stride * OH:stride, kx:kx + stride * OW:stride, :]
            for ky in range(KH) for kx in range(KW)]
    patches = jnp.concatenate(cols, axis=-1).reshape(N * OH * OW, KH * KW * Cin)
    out = _matmul(patches, w.reshape(KH * KW * Cin, Cout), bias)
    return out.reshape(N, OH, OW, Cout)


@functools.partial(jax.jit, static_argnames=("relu",))
def batchnorm(x, gamma, beta, residual=None, *, relu):
    """Training-mode BN fused into a single Pallas pass; bf16 output."""
    N, H, W, C = x.shape
    M = N * H * W
    x2 = x.reshape(M, C)
    g2 = gamma.reshape(1, C)
    b2 = beta.reshape(1, C)
    cp = pltpu.CompilerParams(vmem_limit_bytes=_VMEM_LIMIT)
    if residual is None:
        y = pl.pallas_call(
            functools.partial(_bn_kernel, relu=relu),
            out_shape=jax.ShapeDtypeStruct((M, C), jnp.bfloat16),
            compiler_params=cp,
        )(x2, g2, b2)
    else:
        y = pl.pallas_call(
            _bn_residual_kernel,
            out_shape=jax.ShapeDtypeStruct((M, C), jnp.bfloat16),
            compiler_params=cp,
        )(x2, g2, b2, residual.reshape(M, C))
    return y.reshape(N, H, W, C)


@jax.jit
def maxpool2d_3x3_s2_p1(x):
    # TODO(synk): window extraction still builds a 9x view stack in HBM (bf16,
    # ~3 MB, runs once); a strided in-kernel gather would remove it.
    N, H, W, C = x.shape
    OH = (H + 2 - 3) // 2 + 1
    OW = (W + 2 - 3) // 2 + 1
    neg = float(jnp.finfo(x.dtype).min)
    xp = jnp.pad(x, ((0, 0), (1, 1), (1, 1), (0, 0)), constant_values=neg)
    views = [xp[:, ky:ky + 2 * OH:2, kx:kx + 2 * OW:2, :]
             for ky in range(3) for kx in range(3)]
    M = N * OH * OW
    patches = jnp.stack(views, axis=0).reshape(9, M, C)
    out = pl.pallas_call(
        _maxpool_kernel,
        out_shape=jax.ShapeDtypeStruct((M, C), x.dtype),
        compiler_params=pltpu.CompilerParams(vmem_limit_bytes=_VMEM_LIMIT),
    )(patches)
    return out.reshape(N, OH, OW, C)


# ------------------------------ parameters ---------------------------------

class ParamGen:
    def __init__(self, key):
        self.key = key
        self.i = 0

    def conv(self, kh, kw, cin, cout):
        self.i += 1
        k = jax.random.fold_in(self.key, self.i)
        std = (2.0 / (kh * kw * cin)) ** 0.5  # He init, like torchvision resnet
        w = std * jax.random.normal(k, (kh, kw, cin, cout), jnp.float32)
        return w.astype(jnp.bfloat16)

    def bn(self, c):
        return jnp.ones((c,), jnp.float32), jnp.zeros((c,), jnp.float32)


def _bottleneck_params(pg, inplanes, planes, stride, downsample):
    p = {
        "w1": pg.conv(1, 1, inplanes, planes), "bn1": pg.bn(planes),
        "w2": pg.conv(3, 3, planes, planes), "bn2": pg.bn(planes),
        "w3": pg.conv(1, 1, planes, planes * 4), "bn3": pg.bn(planes * 4),
        "stride": stride,
    }
    if downsample:
        p["wd"] = pg.conv(1, 1, inplanes, planes * 4)
        p["bnd"] = pg.bn(planes * 4)
    return p


def _layer_params(pg, inplanes, planes, blocks, stride):
    params = [_bottleneck_params(pg, inplanes, planes, stride, True)]
    for _ in range(blocks - 1):
        params.append(_bottleneck_params(pg, planes * 4, planes, 1, False))
    return params


def init_params(key):
    pg = ParamGen(key)
    return {
        # ResNet-101 children()[:-3]: conv1, bn1, relu, maxpool, layer1..layer3
        "conv1": pg.conv(7, 7, 3, 64), "bn1": pg.bn(64),
        "layer1": _layer_params(pg, 64, 64, 3, 1),
        "layer2": _layer_params(pg, 256, 128, 4, 2),
        "layer3": _layer_params(pg, 512, 256, 23, 2),
        # regresser.  Conv biases before a training-mode BatchNorm are exactly
        # cancelled by the BN mean subtraction, so reg_b1/reg_b2 are dropped.
        "reg_w1": pg.conv(5, 5, 1024, 512), "reg_bn1": pg.bn(512),
        "reg_w2": pg.conv(5, 5, 512, 128), "reg_bn2": pg.bn(128),
        "reg_w3": pg.conv(1, 1, 128, 20),
        "reg_b3": jnp.zeros((20,), jnp.float32),
    }


# -------------------------------- forward ----------------------------------

def bottleneck_forward(x, p):
    identity = x
    out = conv2d(x, p["w1"])
    out = batchnorm(out, *p["bn1"], relu=True)
    out = conv2d(out, p["w2"], stride=p["stride"], padding=1)
    out = batchnorm(out, *p["bn2"], relu=True)
    out = conv2d(out, p["w3"])
    if "wd" in p:
        identity = conv2d(x, p["wd"], stride=p["stride"])
        identity = batchnorm(identity, *p["bnd"], relu=False)
    # bn3(out) + identity, then ReLU (single fused Pallas kernel)
    return batchnorm(out, *p["bn3"], residual=identity, relu=True)


def yolo_forward(x_nchw, params):
    x = jnp.transpose(x_nchw, (0, 2, 3, 1)).astype(jnp.bfloat16)  # NCHW->NHWC
    # truncated ResNet-101 backbone
    x = conv2d(x, params["conv1"], stride=2, padding=3)
    x = batchnorm(x, *params["bn1"], relu=True)
    x = maxpool2d_3x3_s2_p1(x)
    for layer in ("layer1", "layer2", "layer3"):
        for p in params[layer]:
            x = bottleneck_forward(x, p)
    # regresser (conv biases absorbed by the following training-mode BN)
    x = conv2d(x, params["reg_w1"])
    x = batchnorm(x, *params["reg_bn1"], relu=True)
    x = conv2d(x, params["reg_w2"])
    x = batchnorm(x, *params["reg_bn2"], relu=True)
    x = conv2d(x, params["reg_w3"], bias=params["reg_b3"])  # bias in epilogue
    # already NHWC == PyTorch output.permute(0, 2, 3, 1).contiguous()
    return x


if __name__ == "__main__":
    key = jax.random.PRNGKey(0)
    params = init_params(jax.random.fold_in(key, 1))
    # smallest spatial size that keeps the two valid 5x5 convs legal:
    # 144 / 16 = 9 -> 5 -> 1 spatial in the regresser
    x = jax.random.normal(jax.random.fold_in(key, 2), (2, 3, 144, 144),
                          jnp.float32)
    out = yolo_forward(x, params)
    out = jax.block_until_ready(out)
    assert out.shape == (2, 1, 1, 20), out.shape
    assert bool(jnp.all(jnp.isfinite(out)))
    print("KERNEL_OK")
</pallas_src>

<mosaic_0001>
module attributes {stable_mosaic.version = 11 : i64} {
  func.func @_matmul_plain_kernel(%arg0: i32, %arg1: i32, %arg2: memref<864x147xbf16, #tpu.memory_space<vmem>>, %arg3: memref<147x64xbf16, #tpu.memory_space<vmem>>, %arg4: memref<864x64xf32, #tpu.memory_space<vmem>>) attributes {dimension_semantics = [#tpu.dimension_semantics<parallel>, #tpu.dimension_semantics<parallel>], iteration_bounds = array<i64: 12, 1>, scalar_prefetch = 0 : i64, scratch_operands = 0 : i64, tpu.core_type = #tpu.core_type<tc>, window_params = [{transform_indices = @transform_0, window_bounds = array<i64: 864, 147>}, {transform_indices = @transform_1, window_bounds = array<i64: 147, 64>}, {transform_indices = @transform_2, window_bounds = array<i64: 864, 64>}]} {
    %c0 = arith.constant 0 : index
    %c0_0 = arith.constant 0 : index
    %0 = vector.load %arg2[%c0, %c0_0] : memref<864x147xbf16, #tpu.memory_space<vmem>>, vector<864x147xbf16>
    %c0_1 = arith.constant 0 : index
    %c0_2 = arith.constant 0 : index
    %1 = vector.load %arg3[%c0_1, %c0_2] : memref<147x64xbf16, #tpu.memory_space<vmem>>, vector<147x64xbf16>
    %cst = arith.constant dense<0.000000e+00> : vector<864x64xf32>
    %2 = tpu.matmul %0, %1, %cst {dimension_numbers = #tpu.dot_dimension_numbers<[1], [0], [0], [1], [0, 0, 1, 1], [], []>} : vector<864x147xbf16>, vector<147x64xbf16>, vector<864x64xf32> -> vector<864x64xf32>
    %c0_3 = arith.constant 0 : index
    %c0_4 = arith.constant 0 : index
    %3 = vector.load %arg4[%c0_3, %c0_4] : memref<864x64xf32, #tpu.memory_space<vmem>>, vector<864x64xf32>
    tpu.vector_store %arg4[%c0_3, %c0_4], %2 {strides = array<i32>} : memref<864x64xf32, #tpu.memory_space<vmem>>, vector<864x64xf32>,
    return
  }
  func.func @transform_0(%arg0: i32, %arg1: i32) -> (i32, i32) {
    %c0_i32 = arith.constant 0 : i32
    %c0_i32_0 = arith.constant 0 : i32
    return %arg0, %c0_i32 : i32, i32
  }
  func.func @transform_1(%arg0: i32, %arg1: i32) -> (i32, i32) {
    %c0_i32 = arith.constant 0 : i32
    %c0_i32_0 = arith.constant 0 : i32
    return %c0_i32, %arg1 : i32, i32
  }
  func.func @transform_2(%arg0: i32, %arg1: i32) -> (i32, i32) {
    %c0_i32 = arith.constant 0 : i32
    return %arg0, %arg1 : i32, i32
  }
}

</mosaic_0001>

<bundles_post_ra>
// kernel: conv2d.1
= control target key start
LH: loop header
LB: loop body
LE: loop exit
PB: predicated region body
PF: predicated region fallthrough
CT: control target
= control target key end

     0   :  { %s2135_s9 = smov 0   ;;  %s2137_s10 = smov 0   ;;  %s2590_s0 = inlined_call_operand.vmem [shape: bf16[10368,147], index: 0, kind: input, shape index: {}]   ;;  %s2591_s1 = inlined_call_operand.vmem [shape: bf16[147,64], index: 1, kind: input, shape index: {}]   ;;  %s2592_s2 = inlined_call_operand.vmem [shape: f32[10368,64], index: 2, kind: output, shape index: {}]  }
   0x1   :  { %s2139_s11 = smov 0  }
   0x2 LB: > { %s24_s12 = sadd.s32 1, %s2112_s10  ;;  %p1697_p0 = scmp.ge.s32.totalorder %s2116_s11, 1  ;;  %s2116_s11 = sphi %s2139_s11, %s12_s11   ;;  %s2112_s10 = sphi %s2137_s10, %s2594_s10   ;;  %s2108_s9 = sphi %s2135_s9, %s2593_s9  }
   0x3   : > { %p26_p1 = scmp.ge.s32.totalorder %s24_s12, 12  ;;  %p137_p2 = scmp.lt.s32.totalorder %s2116_s11, 13 }
   0x5   : > { %s2596_s12 = smov (%p26_p1, %s24_s12), 0  ;;  %p138_p3 = pnand %p1697_p0, %p137_p2 }
   0x6   : > { %v1922_v0 = vld [vmem:[%s2591_s1] sm:$0xff] (!%p138_p3)   ;;  %v2118_v1 = vmov (!%p138_p3), 0   ;;  %v1923_v2 = vld [vmem:[%s2591_s1 + $0x8] sm:$0xff] (!%p138_p3)   ;;  %v1924_v3 = vld [vmem:[%s2591_s1 + $0x10] sm:$0xff] (!%p138_p3)   ;;  %s167_s19 = smul.u32 (!%p138_p3), 108, %s2108_s9  ;;  %vm858_vm0 = vcmask (!%p138_p3), 154624  }
   0x7   : > { %141 = sbr.rel (%p138_p3) target bundleno = 470 (0x1d6), region = 28  ;;  %1028 = vmatprep.subr.bf16.mxu0 (!%p138_p3), %v2118_v1  ;;  %1876 = vmatprep.subr.bf16.mxu1 (!%p138_p3), %v2118_v1  ;;  %v1925_v4 = vld [vmem:[%s2591_s1 + $0x18] sm:$0xff] (!%p138_p3)   ;;  %v1926_v5 = vld [vmem:[%s2591_s1 + $0x20] sm:$0xff] (!%p138_p3)   ;;  %v1927_v8 = vld [vmem:[%s2591_s1 + $0x28] sm:$0xff] (!%p138_p3)   ;;  %vm1021_vm1 = vcmask (!%p138_p3), 1040384   ;;  %vm1022_vm2 = vcmask (!%p138_p3), 1041408  }
   0x8   : > { %1029 = vmatpush1.bf16.msra.mxu0 (!%p138_p3), %v1922_v0  ;;  %1886 = vmatpush1.bf16.msra.mxu1 (!%p138_p3), %v1922_v0  ;;  %p168_p4 = scmp.lt.s32.totalorder (!%p138_p3), %s167_s19, 1295  ;;  %v1928_v9 = vld [vmem:[%s2591_s1 + $0x30] sm:$0xff] (!%p138_p3)   ;;  %v1929_v10 = vld [vmem:[%s2591_s1 + $0x38] sm:$0xff] (!%p138_p3)   ;;  %v2119_v11 = vmov (!%p138_p3), 65535   ;;  %v1930_v13 = vld [vmem:[%s2591_s1 + $0x40] sm:$0xff] (!%p138_p3)   ;;  %vm1493_vm3 = vcmask (!%p138_p3), 523264  }
   0x9   : > { %1030 = vmatprep.subr.bf16.mxu0 (!%p138_p3), %v2118_v1  ;;  %1877 = vmatprep.subr.bf16.mxu1 (!%p138_p3), %v2118_v1  ;;  %v1023_v12 = vsel (!%p138_p3), %vm1021_vm1, 4294967295, %v2119_v11  ;;  %v1931_v14 = vld [vmem:[%s2591_s1 + $0x48] ss:$0 sps:$4 sm:$0x33] (!%p138_p3)  }
   0xa   : > { %v1024_v15 = vsel (!%p138_p3), %vm1022_vm2, %v1023_v12, 0 }
   0xb   : > { %v1026_v16 = vand.u32 (!%p138_p3), %v1931_v14, %v1024_v15 }
   0xc   : > { %1031 = vmatpush1.bf16.msra.mxu0 (!%p138_p3), %v1923_v2  ;;  %1887 = vmatpush1.bf16.msra.mxu1 (!%p138_p3), %v1923_v2 }
   0xd   : > { %1032 = vmatprep.subr.bf16.mxu0 (!%p138_p3), %v2118_v1  ;;  %1878 = vmatprep.subr.bf16.mxu1 (!%p138_p3), %v2118_v1 }
   0xe   : > { %s2598_s19 = smov (!%p168_p4, %s167_s19), 1295 }
   0xf   : > { %s1875_s22 = sshll.u32 %s2598_s19, 3 }
  0x10   : > { %1033 = vmatpush1.bf16.msra.mxu0 %v1924_v3  ;;  %1888 = vmatpush1.bf16.msra.mxu1 %v1924_v3  ;;  %s2176_s25 = scalar_lea.vmem %s2590_s0, %s1875_s22  ;;  %s2363_s15 = scalar_lea.vmem %s2592_s2, %s1875_s22 }
  0x11   : > { %1034 = vmatprep.subr.bf16.mxu0 %v2118_v1  ;;  %1879 = vmatprep.subr.bf16.mxu1 %v2118_v1  ;;  %v1934_v6 = vld [vmem:[%s2176_s25 + $0x4] ss:$8 sps:$4 sm:$0xff]   ;;  %v1937_v7 = vld [vmem:[%s2176_s25 + $0x1b4] ss:$8 sps:$4 sm:$0xff]   ;;  %v1932_v17 = vld [vmem:[%s2176_s25] ss:$8 sps:$4 sm:$0xff]  }
  0x12   : > { %1819 = vmatprep.mubr.msk.bf16.mxu0 %vm858_vm0, %v1934_v6  ;;  %1846 = vmatprep.mubr.msk.bf16.mxu1 %vm858_vm0, %v1937_v7  ;;  %v1935_v18 = vld [vmem:[%s2176_s25 + $0x1b0] ss:$8 sps:$4 sm:$0xff]   ;;  %v1938_v19 = vld [vmem:[%s2176_s25 + $0x14] ss:$8 sps:$4 sm:$0xff]   ;;  %v1940_v20 = vld [vmem:[%s2176_s25 + $0x1c4] ss:$8 sps:$4 sm:$0xff]  }
  0x13   : > { %v1942_v21 = vld [vmem:[%s2176_s25 + $0x10] ss:$8 sps:$4 sm:$0xff]   ;;  %v1943_v22 = vld [vmem:[%s2176_s25 + $0x1c0] ss:$8 sps:$4 sm:$0xff]   ;;  %v1944_v23 = vld [vmem:[%s2176_s25 + $0x24] ss:$8 sps:$4 sm:$0xff]  }
  0x14   : > { %1035 = vmatpush1.bf16.msra.mxu0 %v1925_v4  ;;  %1889 = vmatpush1.bf16.msra.mxu1 %v1925_v4  ;;  %v1946_v24 = vld [vmem:[%s2176_s25 + $0x1d4] ss:$8 sps:$4 sm:$0xff]   ;;  %v1948_v25 = vld [vmem:[%s2176_s25 + $0x20] ss:$8 sps:$4 sm:$0xff]   ;;  %v1949_v26 = vld [vmem:[%s2176_s25 + $0x1d0] ss:$8 sps:$4 sm:$0xff]  }
  0x15   : > { %1036 = vmatprep.subr.bf16.mxu0 %v2118_v1  ;;  %1880 = vmatprep.subr.bf16.mxu1 %v2118_v1  ;;  %v1950_v27 = vld [vmem:[%s2176_s25 + $0x34] ss:$8 sps:$4 sm:$0xff]   ;;  %v1952_v28 = vld [vmem:[%s2176_s25 + $0x1e4] ss:$8 sps:$4 sm:$0xff]   ;;  %v1954_v29 = vld [vmem:[%s2176_s25 + $0x30] ss:$8 sps:$4 sm:$0xff]  }
  0x16   : > { %v1955_v30 = vld [vmem:[%s2176_s25 + $0x1e0] ss:$8 sps:$4 sm:$0xff]   ;;  %v1956_v31 = vld [vmem:[%s2176_s25 + $0x44] ss:$8 sps:$4 sm:$0xff]   ;;  %v1958_v32 = vld [vmem:[%s2176_s25 + $0x1f4] ss:$8 sps:$4 sm:$0xff]  }
  0x17   : > { %v1960_v33 = vld [vmem:[%s2176_s25 + $0x40] ss:$8 sps:$4 sm:$0xff]   ;;  %v1961_v34 = vld [vmem:[%s2176_s25 + $0x1f0] ss:$8 sps:$4 sm:$0xff]   ;;  %v1962_v35 = vld [vmem:[%s2176_s25 + $0x54] ss:$8 sps:$4 sm:$0xff]  }
  0x18   : > { %1037 = vmatpush1.bf16.msra.mxu0 %v1926_v5  ;;  %1890 = vmatpush1.bf16.msra.mxu1 %v1926_v5  ;;  %v1964_v36 = vld [vmem:[%s2176_s25 + $0x204] ss:$8 sps:$4 sm:$0xff]   ;;  %v1966_v37 = vld [vmem:[%s2176_s25 + $0x50] ss:$8 sps:$4 sm:$0xff]   ;;  %v1967_v38 = vld [vmem:[%s2176_s25 + $0x200] ss:$8 sps:$4 sm:$0xff]  }
  0x19   : > { %1038 = vmatprep.subr.bf16.mxu0 %v2118_v1  ;;  %1881 = vmatprep.subr.bf16.mxu1 %v2118_v1  ;;  %v1968_v39 = vld [vmem:[%s2176_s25 + $0x64] ss:$8 sps:$4 sm:$0xff]   ;;  %v1970_v40 = vld [vmem:[%s2176_s25 + $0x214] ss:$8 sps:$4 sm:$0xff]   ;;  %v1972_v41 = vld [vmem:[%s2176_s25 + $0x60] ss:$8 sps:$4 sm:$0xff]  }
  0x1a   : > { %v1973_v42 = vld [vmem:[%s2176_s25 + $0x210] ss:$8 sps:$4 sm:$0xff]   ;;  %v1974_v43 = vld [vmem:[%s2176_s25 + $0x74] ss:$8 sps:$4 sm:$0xff]   ;;  %v1976_v44 = vld [vmem:[%s2176_s25 + $0x224] ss:$8 sps:$4 sm:$0xff]  }
  0x1b   : > { %v1978_v45 = vld [vmem:[%s2176_s25 + $0x70] ss:$8 sps:$4 sm:$0xff]   ;;  %v1979_v46 = vld [vmem:[%s2176_s25 + $0x220] ss:$8 sps:$4 sm:$0xff]   ;;  %v1980_v47 = vld [vmem:[%s2176_s25 + $0x84] ss:$8 sps:$4 sm:$0xff]  }
  0x1c   : > { %1039 = vmatpush1.bf16.msra.mxu0 %v1927_v8  ;;  %1891 = vmatpush1.bf16.msra.mxu1 %v1927_v8  ;;  %v1982_v48 = vld [vmem:[%s2176_s25 + $0x234] ss:$8 sps:$4 sm:$0xff]   ;;  %v1984_v49 = vld [vmem:[%s2176_s25 + $0x80] ss:$8 sps:$4 sm:$0xff]   ;;  %v1985_v50 = vld [vmem:[%s2176_s25 + $0x230] ss:$8 sps:$4 sm:$0xff]  }
  0x1d   : > { %1040 = vmatprep.subr.bf16.mxu0 %v2118_v1  ;;  %1882 = vmatprep.subr.bf16.mxu1 %v2118_v1  ;;  %v1986_v51 = vld [vmem:[%s2176_s25 + $0x94] ss:$8 sps:$4 sm:$0xff]   ;;  %v1988_v52 = vld [vmem:[%s2176_s25 + $0x244] ss:$8 sps:$4 sm:$0xff]   ;;  %v1990_v53 = vld [vmem:[%s2176_s25 + $0x90] ss:$8 sps:$4 sm:$0xff]  }
  0x1e   : > { %v1991_v54 = vld [vmem:[%s2176_s25 + $0x240] ss:$8 sps:$4 sm:$0xff]   ;;  %v1992_v55 = vld [vmem:[%s2176_s25 + $0xa4] ss:$8 sps:$4 sm:$0xff]   ;;  %v1994_v56 = vld [vmem:[%s2176_s25 + $0x254] ss:$8 sps:$4 sm:$0xff]  }
  0x1f   : > { %v1996_v57 = vld [vmem:[%s2176_s25 + $0xa0] ss:$8 sps:$4 sm:$0xff]   ;;  %v1997_v58 = vld [vmem:[%s2176_s25 + $0x250] ss:$8 sps:$4 sm:$0xff]   ;;  %v1998_v59 = vld [vmem:[%s2176_s25 + $0xb4] ss:$8 sps:$4 sm:$0xff]  }
  0x20   : > { %1041 = vmatpush1.bf16.msra.mxu0 %v1928_v9  ;;  %1892 = vmatpush1.bf16.msra.mxu1 %v1928_v9  ;;  %v2000_v60 = vld [vmem:[%s2176_s25 + $0x264] ss:$8 sps:$4 sm:$0xff]   ;;  %v2002_v61 = vld [vmem:[%s2176_s25 + $0xb0] ss:$8 sps:$4 sm:$0xff]   ;;  %v2003_v62 = vld [vmem:[%s2176_s25 + $0x260] ss:$8 sps:$4 sm:$0xff]  }
  0x21   : > { %1042 = vmatprep.subr.bf16.mxu0 %v2118_v1  ;;  %1883 = vmatprep.subr.bf16.mxu1 %v2118_v1  ;;  %v2004_v63 = vld [vmem:[%s2176_s25 + $0xc4] ss:$8 sps:$4 sm:$0xff]   ;;  %v2006_v0 = vld [vmem:[%s2176_s25 + $0x274] ss:$8 sps:$4 sm:$0xff]   ;;  %v2009_v2 = vld [vmem:[%s2176_s25 + $0x270] ss:$8 sps:$4 sm:$0xff]  }
  0x22   : > { %v2010_v3 = vld [vmem:[%s2176_s25 + $0xd4] ss:$8 sps:$4 sm:$0xff]   ;;  %v2012_v4 = vld [vmem:[%s2176_s25 + $0x284] ss:$8 sps:$4 sm:$0xff]   ;;  %v2014_v5 = vld [vmem:[%s2176_s25 + $0xd0] ss:$8 sps:$4 sm:$0xff]  }
  0x23   : > { %v2015_v6 = vld [vmem:[%s2176_s25 + $0x280] ss:$8 sps:$4 sm:$0xff]   ;;  %v2016_v7 = vld [vmem:[%s2176_s25 + $0xe4] ss:$8 sps:$4 sm:$0xff]   ;;  %v2018_v8 = vld [vmem:[%s2176_s25 + $0x294] ss:$8 sps:$4 sm:$0xff]  }
  0x24   : > { %1043 = vmatpush1.bf16.msra.mxu0 %v1929_v10  ;;  %1893 = vmatpush1.bf16.msra.mxu1 %v1929_v10  ;;  %v2020_v9 = vld [vmem:[%s2176_s25 + $0xe0] ss:$8 sps:$4 sm:$0xff]   ;;  %v2021_v10 = vld [vmem:[%s2176_s25 + $0x290] ss:$8 sps:$4 sm:$0xff]   ;;  %v2022_v11 = vld [vmem:[%s2176_s25 + $0xf4] ss:$8 sps:$4 sm:$0xff]  }
  0x25   : > { %1044 = vmatprep.subr.bf16.mxu0 %v2118_v1  ;;  %1884 = vmatprep.subr.bf16.mxu1 %v2118_v1  ;;  %v2024_v12 = vld [vmem:[%s2176_s25 + $0x2a4] ss:$8 sps:$4 sm:$0xff]   ;;  %v2027_v14 = vld [vmem:[%s2176_s25 + $0x2a0] ss:$8 sps:$4 sm:$0xff]  }
  0x26   : > { %v2028_v15 = vld [vmem:[%s2176_s25 + $0x104] ss:$8 sps:$4 sm:$0xff]  }
  0x28   : > { %1045 = vmatpush1.bf16.msra.mxu0 %v1930_v13  ;;  %1894 = vmatpush1.bf16.msra.mxu1 %v1930_v13  ;;  %v2026_v13 = vld [vmem:[%s2176_s25 + $0xf0] ss:$8 sps:$4 sm:$0xff]  }
  0x29   : > { %1046 = vmatprep.subr.bf16.mxu0 %v2118_v1  ;;  %1885 = vmatprep.subr.bf16.mxu1 %v2118_v1  ;;  %v2008_v1 = vld [vmem:[%s2176_s25 + $0xc0] ss:$8 sps:$4 sm:$0xff]  }
  0x2c   : > { %1047 = vmatpush1.bf16.msra.mxu0 %v1026_v16  ;;  %1895 = vmatpush1.bf16.msra.mxu1 %v1026_v16  ;;  %v2030_v16 = vld [vmem:[%s2176_s25 + $0x2b4] ss:$8 sps:$4 sm:$0xff]  }
  0x2f   : > { %1061 = vmatmul.mubr.bf16.vlgmr.msra.gmra.mrb[0].mxu0 %v1932_v17  ;;  %1277 = vmatmul.mubr.bf16.vlgmr.msra.gmra.mrb[0].mxu1 %v1935_v18  ;;  %v2032_v17 = vld [vmem:[%s2176_s25 + $0x100] ss:$8 sps:$4 sm:$0xff]   ;;  %v2033_v18 = vld [vmem:[%s2176_s25 + $0x2b0] ss:$8 sps:$4 sm:$0xff]  }
  0x30   : > { %1820 = vmatprep.mubr.msk.bf16.mxu0 %vm858_vm0, %v1938_v19  ;;  %1847 = vmatprep.mubr.msk.bf16.mxu1 %vm858_vm0, %v1940_v20  ;;  %v2034_v19 = vld [vmem:[%s2176_s25 + $0x114] ss:$8 sps:$4 sm:$0xff]   ;;  %v2036_v20 = vld [vmem:[%s2176_s25 + $0x2c4] ss:$8 sps:$4 sm:$0xff]  }
  0x37   : > { %1069 = vmatmul.mubr.bf16.gmra.mrb[4].mxu0 %v1942_v21  ;;  %1285 = vmatmul.mubr.bf16.gmra.mrb[4].mxu1 %v1943_v22  ;;  %v2038_v21 = vld [vmem:[%s2176_s25 + $0x110] ss:$8 sps:$4 sm:$0xff]   ;;  %v2039_v22 = vld [vmem:[%s2176_s25 + $0x2c0] ss:$8 sps:$4 sm:$0xff]  }
  0x38   : > { %1821 = vmatprep.mubr.msk.bf16.mxu0 %vm858_vm0, %v1944_v23  ;;  %1848 = vmatprep.mubr.msk.bf16.mxu1 %vm858_vm0, %v1946_v24  ;;  %v2040_v23 = vld [vmem:[%s2176_s25 + $0x124] ss:$8 sps:$4 sm:$0xff]   ;;  %v2042_v24 = vld [vmem:[%s2176_s25 + $0x2d4] ss:$8 sps:$4 sm:$0xff]  }
  0x3f   : > { %1077 = vmatmul.mubr.bf16.gmra.mrb[8].mxu0 %v1948_v25  ;;  %1293 = vmatmul.mubr.bf16.gmra.mrb[8].mxu1 %v1949_v26  ;;  %v2044_v25 = vld [vmem:[%s2176_s25 + $0x120] ss:$8 sps:$4 sm:$0xff]   ;;  %v2045_v26 = vld [vmem:[%s2176_s25 + $0x2d0] ss:$8 sps:$4 sm:$0xff]  }
  0x40   : > { %1822 = vmatprep.mubr.msk.bf16.mxu0 %vm858_vm0, %v1950_v27  ;;  %1849 = vmatprep.mubr.msk.bf16.mxu1 %vm858_vm0, %v1952_v28  ;;  %v2046_v27 = vld [vmem:[%s2176_s25 + $0x134] ss:$8 sps:$4 sm:$0xff]   ;;  %v2048_v28 = vld [vmem:[%s2176_s25 + $0x2e4] ss:$8 sps:$4 sm:$0xff]  }
  0x47   : > { %1085 = vmatmul.mubr.bf16.gmra.mrb[12].mxu0 %v1954_v29  ;;  %1301 = vmatmul.mubr.bf16.gmra.mrb[12].mxu1 %v1955_v30  ;;  %v2050_v29 = vld [vmem:[%s2176_s25 + $0x130] ss:$8 sps:$4 sm:$0xff]   ;;  %v2051_v30 = vld [vmem:[%s2176_s25 + $0x2e0] ss:$8 sps:$4 sm:$0xff]  }
  0x48   : > { %1823 = vmatprep.mubr.msk.bf16.mxu0 %vm858_vm0, %v1956_v31  ;;  %1850 = vmatprep.mubr.msk.bf16.mxu1 %vm858_vm0, %v1958_v32  ;;  %v2052_v31 = vld [vmem:[%s2176_s25 + $0x144] ss:$8 sps:$4 sm:$0xff]   ;;  %v2054_v32 = vld [vmem:[%s2176_s25 + $0x2f4] ss:$8 sps:$4 sm:$0xff]  }
  0x4f   : > { %1093 = vmatmul.mubr.bf16.gmra.mrb[16].mxu0 %v1960_v33  ;;  %1309 = vmatmul.mubr.bf16.gmra.mrb[16].mxu1 %v1961_v34  ;;  %v2056_v33 = vld [vmem:[%s2176_s25 + $0x140] ss:$8 sps:$4 sm:$0xff]   ;;  %v2057_v34 = vld [vmem:[%s2176_s25 + $0x2f0] ss:$8 sps:$4 sm:$0xff]  }
  0x50   : > { %1824 = vmatprep.mubr.msk.bf16.mxu0 %vm858_vm0, %v1962_v35  ;;  %1851 = vmatprep.mubr.msk.bf16.mxu1 %vm858_vm0, %v1964_v36  ;;  %v2058_v35 = vld [vmem:[%s2176_s25 + $0x154] ss:$8 sps:$4 sm:$0xff]   ;;  %v2060_v36 = vld [vmem:[%s2176_s25 + $0x304] ss:$8 sps:$4 sm:$0xff]  }
  0x57   : > { %1101 = vmatmul.mubr.bf16.gmra.mrb[20].mxu0 %v1966_v37  ;;  %1317 = vmatmul.mubr.bf16.gmra.mrb[20].mxu1 %v1967_v38  ;;  %v2062_v37 = vld [vmem:[%s2176_s25 + $0x150] ss:$8 sps:$4 sm:$0xff]   ;;  %v2063_v38 = vld [vmem:[%s2176_s25 + $0x300] ss:$8 sps:$4 sm:$0xff]  }
  0x58   : > { %1825 = vmatprep.mubr.msk.bf16.mxu0 %vm858_vm0, %v1968_v39  ;;  %1852 = vmatprep.mubr.msk.bf16.mxu1 %vm858_vm0, %v1970_v40  ;;  %v2064_v39 = vld [vmem:[%s2176_s25 + $0x164] ss:$8 sps:$4 sm:$0xff]   ;;  %v2066_v40 = vld [vmem:[%s2176_s25 + $0x314] ss:$8 sps:$4 sm:$0xff]  }
  0x5f   : > { %1109 = vmatmul.mubr.bf16.gmra.mrb[24].mxu0 %v1972_v41  ;;  %1325 = vmatmul.mubr.bf16.gmra.mrb[24].mxu1 %v1973_v42  ;;  %v2068_v41 = vld [vmem:[%s2176_s25 + $0x160] ss:$8 sps:$4 sm:$0xff]   ;;  %v2069_v42 = vld [vmem:[%s2176_s25 + $0x310] ss:$8 sps:$4 sm:$0xff]  }
  0x60   : > { %1826 = vmatprep.mubr.msk.bf16.mxu0 %vm858_vm0, %v1974_v43  ;;  %1853 = vmatprep.mubr.msk.bf16.mxu1 %vm858_vm0, %v1976_v44  ;;  %v2070_v43 = vld [vmem:[%s2176_s25 + $0x174] ss:$8 sps:$4 sm:$0xff]   ;;  %v2072_v44 = vld [vmem:[%s2176_s25 + $0x324] ss:$8 sps:$4 sm:$0xff]  }
  0x67   : > { %1117 = vmatmul.mubr.bf16.gmra.mrb[28].mxu0 %v1978_v45  ;;  %1333 = vmatmul.mubr.bf16.gmra.mrb[28].mxu1 %v1979_v46  ;;  %v2074_v45 = vld [vmem:[%s2176_s25 + $0x170] ss:$8 sps:$4 sm:$0xff]   ;;  %v2075_v46 = vld [vmem:[%s2176_s25 + $0x320] ss:$8 sps:$4 sm:$0xff]  }
  0x68   : > { %1827 = vmatprep.mubr.msk.bf16.mxu0 %vm858_vm0, %v1980_v47  ;;  %1854 = vmatprep.mubr.msk.bf16.mxu1 %vm858_vm0, %v1982_v48  ;;  %v2076_v47 = vld [vmem:[%s2176_s25 + $0x184] ss:$8 sps:$4 sm:$0xff]   ;;  %v2078_v48 = vld [vmem:[%s2176_s25 + $0x334] ss:$8 sps:$4 sm:$0xff]  }
  0x6f   : > { %1125 = vmatmul.mubr.bf16.gmra.mrb[32].mxu0 %v1984_v49  ;;  %1341 = vmatmul.mubr.bf16.gmra.mrb[32].mxu1 %v1985_v50  ;;  %v2080_v49 = vld [vmem:[%s2176_s25 + $0x180] ss:$8 sps:$4 sm:$0xff]   ;;  %v2081_v50 = vld [vmem:[%s2176_s25 + $0x330] ss:$8 sps:$4 sm:$0xff]  }
  0x70   : > { %1828 = vmatprep.mubr.msk.bf16.mxu0 %vm858_vm0, %v1986_v51  ;;  %1855 = vmatprep.mubr.msk.bf16.mxu1 %vm858_vm0, %v1988_v52  ;;  %v2082_v51 = vld [vmem:[%s2176_s25 + $0x194] ss:$8 sps:$4 sm:$0xff]   ;;  %v2084_v52 = vld [vmem:[%s2176_s25 + $0x344] ss:$8 sps:$4 sm:$0xff]  }
  0x77   : > { %1133 = vmatmul.mubr.bf16.gmra.mrb[36].mxu0 %v1990_v53  ;;  %1349 = vmatmul.mubr.bf16.gmra.mrb[36].mxu1 %v1991_v54  ;;  %v2086_v53 = vld [vmem:[%s2176_s25 + $0x190] ss:$8 sps:$4 sm:$0xff]   ;;  %v2087_v54 = vld [vmem:[%s2176_s25 + $0x340] ss:$8 sps:$4 sm:$0xff]  }
  0x78   : > { %1829 = vmatprep.mubr.msk.bf16.mxu0 %vm858_vm0, %v1992_v55  ;;  %1856 = vmatprep.mubr.msk.bf16.mxu1 %vm858_vm0, %v1994_v56  ;;  %v2088_v55 = vld [vmem:[%s2176_s25 + $0x1a4] ss:$8 sps:$4 sm:$0xff]   ;;  %v2090_v56 = vld [vmem:[%s2176_s25 + $0x354] ss:$8 sps:$4 sm:$0xff]  }
  0x7f   : > { %1141 = vmatmul.mubr.bf16.gmra.mrb[40].mxu0 %v1996_v57  ;;  %1357 = vmatmul.mubr.bf16.gmra.mrb[40].mxu1 %v1997_v58  ;;  %v2092_v57 = vld [vmem:[%s2176_s25 + $0x1a0] ss:$8 sps:$4 sm:$0xff]   ;;  %v2093_v58 = vld [vmem:[%s2176_s25 + $0x350] ss:$8 sps:$4 sm:$0xff]  }
  0x80   : > { %1830 = vmatprep.mubr.msk.bf16.mxu0 %vm858_vm0, %v1998_v59  ;;  %1857 = vmatprep.mubr.msk.bf16.mxu1 %vm858_vm0, %v2000_v60 }
  0x87   : > { %1149 = vmatmul.mubr.bf16.gmra.mrb[44].mxu0 %v2002_v61  ;;  %1365 = vmatmul.mubr.bf16.gmra.mrb[44].mxu1 %v2003_v62 }
  0x88   : > { %1831 = vmatprep.mubr.msk.bf16.mxu0 %vm858_vm0, %v2004_v63  ;;  %1858 = vmatprep.mubr.msk.bf16.mxu1 %vm858_vm0, %v2006_v0 }
  0x8f   : > { %1157 = vmatmul.mubr.bf16.gmra.mrb[48].mxu0 %v2008_v1  ;;  %1373 = vmatmul.mubr.bf16.gmra.mrb[48].mxu1 %v2009_v2 }
  0x90   : > { %1832 = vmatprep.mubr.msk.bf16.mxu0 %vm858_vm0, %v2010_v3  ;;  %1859 = vmatprep.mubr.msk.bf16.mxu1 %vm858_vm0, %v2012_v4 }
  0x97   : > { %1165 = vmatmul.mubr.bf16.gmra.mrb[52].mxu0 %v2014_v5  ;;  %1381 = vmatmul.mubr.bf16.gmra.mrb[52].mxu1 %v2015_v6 }
  0x98   : > { %1833 = vmatprep.mubr.msk.bf16.mxu0 %vm858_vm0, %v2016_v7  ;;  %1860 = vmatprep.mubr.msk.bf16.mxu1 %vm858_vm0, %v2018_v8 }
  0x9f   : > { %1173 = vmatmul.mubr.bf16.gmra.mrb[56].mxu0 %v2020_v9  ;;  %1389 = vmatmul.mubr.bf16.gmra.mrb[56].mxu1 %v2021_v10 }
  0xa0   : > { %1834 = vmatprep.mubr.msk.bf16.mxu0 %vm858_vm0, %v2022_v11  ;;  %1861 = vmatprep.mubr.msk.bf16.mxu1 %vm858_vm0, %v2024_v12 }
  0xa7   : > { %1181 = vmatmul.mubr.bf16.gmra.mrb[60].mxu0 %v2026_v13  ;;  %1397 = vmatmul.mubr.bf16.gmra.mrb[60].mxu1 %v2027_v14 }
  0xa8   : > { %1835 = vmatprep.mubr.msk.bf16.mxu0 %vm858_vm0, %v2028_v15  ;;  %1862 = vmatprep.mubr.msk.bf16.mxu1 %vm858_vm0, %v2030_v16 }
  0xaf   : > { %1189 = vmatmul.mubr.bf16.gmra.mrb[64].mxu0 %v2032_v17  ;;  %1405 = vmatmul.mubr.bf16.gmra.mrb[64].mxu1 %v2033_v18 }
  0xb0   : > { %1836 = vmatprep.mubr.msk.bf16.mxu0 %vm858_vm0, %v2034_v19  ;;  %1863 = vmatprep.mubr.msk.bf16.mxu1 %vm858_vm0, %v2036_v20 }
  0xb7   : > { %1197 = vmatmul.mubr.bf16.gmra.mrb[68].mxu0 %v2038_v21  ;;  %1413 = vmatmul.mubr.bf16.gmra.mrb[68].mxu1 %v2039_v22 }
  0xb8   : > { %1837 = vmatprep.mubr.msk.bf16.mxu0 %vm858_vm0, %v2040_v23  ;;  %1864 = vmatprep.mubr.msk.bf16.mxu1 %vm858_vm0, %v2042_v24 }
  0xbf   : > { %1205 = vmatmul.mubr.bf16.gmra.mrb[72].mxu0 %v2044_v25  ;;  %1421 = vmatmul.mubr.bf16.gmra.mrb[72].mxu1 %v2045_v26 }
  0xc0   : > { %1838 = vmatprep.mubr.msk.bf16.mxu0 %vm858_vm0, %v2046_v27  ;;  %1865 = vmatprep.mubr.msk.bf16.mxu1 %vm858_vm0, %v2048_v28 }
  0xc7   : > { %1213 = vmatmul.mubr.bf16.gmra.mrb[76].mxu0 %v2050_v29  ;;  %1429 = vmatmul.mubr.bf16.gmra.mrb[76].mxu1 %v2051_v30 }
  0xc8   : > { %1839 = vmatprep.mubr.msk.bf16.mxu0 %vm858_vm0, %v2052_v31  ;;  %1866 = vmatprep.mubr.msk.bf16.mxu1 %vm858_vm0, %v2054_v32 }
  0xcf   : > { %1221 = vmatmul.mubr.bf16.gmra.mrb[80].mxu0 %v2056_v33  ;;  %1437 = vmatmul.mubr.bf16.gmra.mrb[80].mxu1 %v2057_v34 }
  0xd0   : > { %1840 = vmatprep.mubr.msk.bf16.mxu0 %vm858_vm0, %v2058_v35  ;;  %1867 = vmatprep.mubr.msk.bf16.mxu1 %vm858_vm0, %v2060_v36 }
  0xd7   : > { %1229 = vmatmul.mubr.bf16.gmra.mrb[84].mxu0 %v2062_v37  ;;  %1445 = vmatmul.mubr.bf16.gmra.mrb[84].mxu1 %v2063_v38 }
  0xd8   : > { %1841 = vmatprep.mubr.msk.bf16.mxu0 %vm858_vm0, %v2064_v39  ;;  %1868 = vmatprep.mubr.msk.bf16.mxu1 %vm858_vm0, %v2066_v40 }
  0xdf   : > { %1237 = vmatmul.mubr.bf16.gmra.mrb[88].mxu0 %v2068_v41  ;;  %1453 = vmatmul.mubr.bf16.gmra.mrb[88].mxu1 %v2069_v42 }
  0xe0   : > { %1842 = vmatprep.mubr.msk.bf16.mxu0 %vm858_vm0, %v2070_v43  ;;  %1869 = vmatprep.mubr.msk.bf16.mxu1 %vm858_vm0, %v2072_v44 }
  0xe7   : > { %1245 = vmatmul.mubr.bf16.gmra.mrb[92].mxu0 %v2074_v45  ;;  %1461 = vmatmul.mubr.bf16.gmra.mrb[92].mxu1 %v2075_v46 }
  0xe8   : > { %1843 = vmatprep.mubr.msk.bf16.mxu0 %vm858_vm0, %v2076_v47  ;;  %1870 = vmatprep.mubr.msk.bf16.mxu1 %vm858_vm0, %v2078_v48 }
  0xef   : > { %1253 = vmatmul.mubr.bf16.gmra.mrb[96].mxu0 %v2080_v49  ;;  %1469 = vmatmul.mubr.bf16.gmra.mrb[96].mxu1 %v2081_v50 }
  0xf0   : > { %1844 = vmatprep.mubr.msk.bf16.mxu0 %vm858_vm0, %v2082_v51  ;;  %1871 = vmatprep.mubr.msk.bf16.mxu1 %vm858_vm0, %v2084_v52 }
  0xf7   : > { %1261 = vmatmul.mubr.bf16.gmra.mrb[100].mxu0 %v2086_v53  ;;  %1477 = vmatmul.mubr.bf16.gmra.mrb[100].mxu1 %v2087_v54 }
  0xf8   : > { %1845 = vmatprep.mubr.msk.bf16.mxu0 %vm858_vm0, %v2088_v55  ;;  %1872 = vmatprep.mubr.msk.bf16.mxu1 %vm858_vm0, %v2090_v56 }
  0xff   : > { %1269 = vmatmul.mubr.bf16.gmra.mrb[104].mxu0 %v2092_v57  ;;  %1485 = vmatmul.mubr.bf16.gmra.mrb[104].mxu1 %v2093_v58 }
 0x102   : > { %v1062_v59 = vpop.f32.mrb[0].mxu0  ;;  %v1278_v60 = vpop.f32.mrb[0].mxu1 }
 0x103   : > { %1494 = vst.msk [vmem:[%s2363_s15] sm:$0xff] %vm1493_vm3, %v1062_v59  ;;  %1548 = vst.msk [vmem:[%s2363_s15 + $0x1b0] sm:$0xff] %vm1493_vm3, %v1278_v60  ;;  %v1064_v61 = vpop.f32.mrb[1].mxu0  ;;  %v1280_v62 = vpop.f32.mrb[1].mxu1 }
 0x104   : > { %v1065_v63 = vpop.f32.mrb[2].mxu0  ;;  %v1281_v0 = vpop.f32.mrb[2].mxu1 }
 0x105   : > { %1495 = vst.msk [vmem:[%s2363_s15 + $0x8] sm:$0xff] %vm1493_vm3, %v1065_v63  ;;  %1549 = vst.msk [vmem:[%s2363_s15 + $0x1b8] sm:$0xff] %vm1493_vm3, %v1281_v0  ;;  %v1067_v1 = vpop.f32.mrb[3].mxu0  ;;  %v1283_v2 = vpop.f32.mrb[3].mxu1 }
 0x10a   : > { %v1070_v3 = vpop.f32.mrb[4].mxu0  ;;  %v1286_v4 = vpop.f32.mrb[4].mxu1 }
 0x10b   : > { %1496 = vst.msk [vmem:[%s2363_s15 + $0x10] sm:$0xff] %vm1493_vm3, %v1070_v3  ;;  %1550 = vst.msk [vmem:[%s2363_s15 + $0x1c0] sm:$0xff] %vm1493_vm3, %v1286_v4  ;;  %v1072_v5 = vpop.f32.mrb[5].mxu0  ;;  %v1288_v6 = vpop.f32.mrb[5].mxu1 }
 0x10c   : > { %v1073_v7 = vpop.f32.mrb[6].mxu0  ;;  %v1289_v8 = vpop.f32.mrb[6].mxu1 }
 0x10d   : > { %1497 = vst.msk [vmem:[%s2363_s15 + $0x18] sm:$0xff] %vm1493_vm3, %v1073_v7  ;;  %1551 = vst.msk [vmem:[%s2363_s15 + $0x1c8] sm:$0xff] %vm1493_vm3, %v1289_v8  ;;  %v1075_v9 = vpop.f32.mrb[7].mxu0  ;;  %v1291_v10 = vpop.f32.mrb[7].mxu1 }
 0x112   : > { %v1078_v11 = vpop.f32.mrb[8].mxu0  ;;  %v1294_v12 = vpop.f32.mrb[8].mxu1 }
 0x113   : > { %1498 = vst.msk [vmem:[%s2363_s15 + $0x20] sm:$0xff] %vm1493_vm3, %v1078_v11  ;;  %1552 = vst.msk [vmem:[%s2363_s15 + $0x1d0] sm:$0xff] %vm1493_vm3, %v1294_v12  ;;  %v1080_v13 = vpop.f32.mrb[9].mxu0  ;;  %v1296_v14 = vpop.f32.mrb[9].mxu1 }
 0x114   : > { %v1081_v15 = vpop.f32.mrb[10].mxu0  ;;  %v1297_v16 = vpop.f32.mrb[10].mxu1 }
 0x115   : > { %1499 = vst.msk [vmem:[%s2363_s15 + $0x28] sm:$0xff] %vm1493_vm3, %v1081_v15  ;;  %1553 = vst.msk [vmem:[%s2363_s15 + $0x1d8] sm:$0xff] %vm1493_vm3, %v1297_v16  ;;  %v1083_v17 = vpop.f32.mrb[11].mxu0  ;;  %v1299_v18 = vpop.f32.mrb[11].mxu1 }
 0x11a   : > { %v1086_v19 = vpop.f32.mrb[12].mxu0  ;;  %v1302_v20 = vpop.f32.mrb[12].mxu1 }
 0x11b   : > { %1500 = vst.msk [vmem:[%s2363_s15 + $0x30] sm:$0xff] %vm1493_vm3, %v1086_v19  ;;  %1554 = vst.msk [vmem:[%s2363_s15 + $0x1e0] sm:$0xff] %vm1493_vm3, %v1302_v20  ;;  %v1088_v21 = vpop.f32.mrb[13].mxu0  ;;  %v1304_v22 = vpop.f32.mrb[13].mxu1 }
 0x11c   : > { %v1089_v23 = vpop.f32.mrb[14].mxu0  ;;  %v1305_v24 = vpop.f32.mrb[14].mxu1 }
 0x11d   : > { %1501 = vst.msk [vmem:[%s2363_s15 + $0x38] sm:$0xff] %vm1493_vm3, %v1089_v23  ;;  %1555 = vst.msk [vmem:[%s2363_s15 + $0x1e8] sm:$0xff] %vm1493_vm3, %v1305_v24  ;;  %v1091_v25 = vpop.f32.mrb[15].mxu0  ;;  %v1307_v26 = vpop.f32.mrb[15].mxu1 }
 0x122   : > { %v1094_v27 = vpop.f32.mrb[16].mxu0  ;;  %v1310_v28 = vpop.f32.mrb[16].mxu1 }
 0x123   : > { %1502 = vst.msk [vmem:[%s2363_s15 + $0x40] sm:$0xff] %vm1493_vm3, %v1094_v27  ;;  %1556 = vst.msk [vmem:[%s2363_s15 + $0x1f0] sm:$0xff] %vm1493_vm3, %v1310_v28  ;;  %v1096_v29 = vpop.f32.mrb[17].mxu0  ;;  %v1312_v30 = vpop.f32.mrb[17].mxu1 }
 0x124   : > { %v1097_v31 = vpop.f32.mrb[18].mxu0  ;;  %v1313_v32 = vpop.f32.mrb[18].mxu1 }
 0x125   : > { %1503 = vst.msk [vmem:[%s2363_s15 + $0x48] sm:$0xff] %vm1493_vm3, %v1097_v31  ;;  %1557 = vst.msk [vmem:[%s2363_s15 + $0x1f8] sm:$0xff] %vm1493_vm3, %v1313_v32  ;;  %v1099_v33 = vpop.f32.mrb[19].mxu0  ;;  %v1315_v34 = vpop.f32.mrb[19].mxu1 }
 0x12a   : > { %v1102_v35 = vpop.f32.mrb[20].mxu0  ;;  %v1318_v36 = vpop.f32.mrb[20].mxu1 }
 0x12b   : > { %1504 = vst.msk [vmem:[%s2363_s15 + $0x50] sm:$0xff] %vm1493_vm3, %v1102_v35  ;;  %1558 = vst.msk [vmem:[%s2363_s15 + $0x200] sm:$0xff] %vm1493_vm3, %v1318_v36  ;;  %v1104_v37 = vpop.f32.mrb[21].mxu0  ;;  %v1320_v38 = vpop.f32.mrb[21].mxu1 }
 0x12c   : > { %v1105_v39 = vpop.f32.mrb[22].mxu0  ;;  %v1321_v40 = vpop.f32.mrb[22].mxu1 }
 0x12d   : > { %1505 = vst.msk [vmem:[%s2363_s15 + $0x58] sm:$0xff] %vm1493_vm3, %v1105_v39  ;;  %1559 = vst.msk [vmem:[%s2363_s15 + $0x208] sm:$0xff] %vm1493_vm3, %v1321_v40  ;;  %v1107_v41 = vpop.f32.mrb[23].mxu0  ;;  %v1323_v42 = vpop.f32.mrb[23].mxu1 }
 0x132   : > { %v1110_v43 = vpop.f32.mrb[24].mxu0  ;;  %v1326_v44 = vpop.f32.mrb[24].mxu1 }
 0x133   : > { %1506 = vst.msk [vmem:[%s2363_s15 + $0x60] sm:$0xff] %vm1493_vm3, %v1110_v43  ;;  %1560 = vst.msk [vmem:[%s2363_s15 + $0x210] sm:$0xff] %vm1493_vm3, %v1326_v44  ;;  %v1112_v45 = vpop.f32.mrb[25].mxu0  ;;  %v1328_v46 = vpop.f32.mrb[25].mxu1 }
 0x134   : > { %v1113_v47 = vpop.f32.mrb[26].mxu0  ;;  %v1329_v48 = vpop.f32.mrb[26].mxu1 }
 0x135   : > { %1507 = vst.msk [vmem:[%s2363_s15 + $0x68] sm:$0xff] %vm1493_vm3, %v1113_v47  ;;  %1561 = vst.msk [vmem:[%s2363_s15 + $0x218] sm:$0xff] %vm1493_vm3, %v1329_v48  ;;  %v1115_v49 = vpop.f32.mrb[27].mxu0  ;;  %v1331_v50 = vpop.f32.mrb[27].mxu1 }
 0x13a   : > { %v1118_v51 = vpop.f32.mrb[28].mxu0  ;;  %v1334_v52 = vpop.f32.mrb[28].mxu1 }
 0x13b   : > { %1508 = vst.msk [vmem:[%s2363_s15 + $0x70] sm:$0xff] %vm1493_vm3, %v1118_v51  ;;  %1562 = vst.msk [vmem:[%s2363_s15 + $0x220] sm:$0xff] %vm1493_vm3, %v1334_v52  ;;  %v1120_v53 = vpop.f32.mrb[29].mxu0  ;;  %v1336_v54 = vpop.f32.mrb[29].mxu1 }
 0x13c   : > { %v1121_v55 = vpop.f32.mrb[30].mxu0  ;;  %v1337_v56 = vpop.f32.mrb[30].mxu1 }
 0x13d   : > { %1509 = vst.msk [vmem:[%s2363_s15 + $0x78] sm:$0xff] %vm1493_vm3, %v1121_v55  ;;  %1563 = vst.msk [vmem:[%s2363_s15 + $0x228] sm:$0xff] %vm1493_vm3, %v1337_v56  ;;  %v1123_v57 = vpop.f32.mrb[31].mxu0  ;;  %v1339_v58 = vpop.f32.mrb[31].mxu1 }
 0x142   : > { %v1126_v59 = vpop.f32.mrb[32].mxu0  ;;  %v1342_v60 = vpop.f32.mrb[32].mxu1 }
 0x143   : > { %1510 = vst.msk [vmem:[%s2363_s15 + $0x80] sm:$0xff] %vm1493_vm3, %v1126_v59  ;;  %1564 = vst.msk [vmem:[%s2363_s15 + $0x230] sm:$0xff] %vm1493_vm3, %v1342_v60  ;;  %v1128_v61 = vpop.f32.mrb[33].mxu0  ;;  %v1344_v62 = vpop.f32.mrb[33].mxu1 }
 0x144   : > { %v1129_v63 = vpop.f32.mrb[34].mxu0  ;;  %v1345_v0 = vpop.f32.mrb[34].mxu1 }
 0x145   : > { %1511 = vst.msk [vmem:[%s2363_s15 + $0x88] sm:$0xff] %vm1493_vm3, %v1129_v63  ;;  %1565 = vst.msk [vmem:[%s2363_s15 + $0x238] sm:$0xff] %vm1493_vm3, %v1345_v0  ;;  %v1131_v1 = vpop.f32.mrb[35].mxu0  ;;  %v1347_v2 = vpop.f32.mrb[35].mxu1 }
 0x14a   : > { %v1134_v3 = vpop.f32.mrb[36].mxu0  ;;  %v1350_v4 = vpop.f32.mrb[36].mxu1 }
 0x14b   : > { %1512 = vst.msk [vmem:[%s2363_s15 + $0x90] sm:$0xff] %vm1493_vm3, %v1134_v3  ;;  %1566 = vst.msk [vmem:[%s2363_s15 + $0x240] sm:$0xff] %vm1493_vm3, %v1350_v4  ;;  %v1136_v5 = vpop.f32.mrb[37].mxu0  ;;  %v1352_v6 = vpop.f32.mrb[37].mxu1 }
 0x14c   : > { %v1137_v7 = vpop.f32.mrb[38].mxu0  ;;  %v1353_v8 = vpop.f32.mrb[38].mxu1 }
 0x14d   : > { %1513 = vst.msk [vmem:[%s2363_s15 + $0x98] sm:$0xff] %vm1493_vm3, %v1137_v7  ;;  %1567 = vst.msk [vmem:[%s2363_s15 + $0x248] sm:$0xff] %vm1493_vm3, %v1353_v8  ;;  %v1139_v9 = vpop.f32.mrb[39].mxu0  ;;  %v1355_v10 = vpop.f32.mrb[39].mxu1 }
 0x152   : > { %v1142_v11 = vpop.f32.mrb[40].mxu0  ;;  %v1358_v12 = vpop.f32.mrb[40].mxu1 }
 0x153   : > { %1514 = vst.msk [vmem:[%s2363_s15 + $0xa0] sm:$0xff] %vm1493_vm3, %v1142_v11  ;;  %1568 = vst.msk [vmem:[%s2363_s15 + $0x250] sm:$0xff] %vm1493_vm3, %v1358_v12  ;;  %v1144_v13 = vpop.f32.mrb[41].mxu0  ;;  %v1360_v14 = vpop.f32.mrb[41].mxu1 }
 0x154   : > { %v1145_v15 = vpop.f32.mrb[42].mxu0  ;;  %v1361_v16 = vpop.f32.mrb[42].mxu1 }
 0x155   : > { %1515 = vst.msk [vmem:[%s2363_s15 + $0xa8] sm:$0xff] %vm1493_vm3, %v1145_v15  ;;  %1569 = vst.msk [vmem:[%s2363_s15 + $0x258] sm:$0xff] %vm1493_vm3, %v1361_v16  ;;  %v1147_v17 = vpop.f32.mrb[43].mxu0  ;;  %v1363_v18 = vpop.f32.mrb[43].mxu1 }
 0x15a   : > { %v1150_v19 = vpop.f32.mrb[44].mxu0  ;;  %v1366_v20 = vpop.f32.mrb[44].mxu1 }
 0x15b   : > { %1516 = vst.msk [vmem:[%s2363_s15 + $0xb0] sm:$0xff] %vm1493_vm3, %v1150_v19  ;;  %1570 = vst.msk [vmem:[%s2363_s15 + $0x260] sm:$0xff] %vm1493_vm3, %v1366_v20  ;;  %v1152_v21 = vpop.f32.mrb[45].mxu0  ;;  %v1368_v22 = vpop.f32.mrb[45].mxu1 }
 0x15c   : > { %v1153_v23 = vpop.f32.mrb[46].mxu0  ;;  %v1369_v24 = vpop.f32.mrb[46].mxu1 }
 0x15d   : > { %1517 = vst.msk [vmem:[%s2363_s15 + $0xb8] sm:$0xff] %vm1493_vm3, %v1153_v23  ;;  %1571 = vst.msk [vmem:[%s2363_s15 + $0x268] sm:$0xff] %vm1493_vm3, %v1369_v24  ;;  %v1155_v25 = vpop.f32.mrb[47].mxu0  ;;  %v1371_v26 = vpop.f32.mrb[47].mxu1 }
 0x162   : > { %v1158_v27 = vpop.f32.mrb[48].mxu0  ;;  %v1374_v28 = vpop.f32.mrb[48].mxu1 }
 0x163   : > { %1518 = vst.msk [vmem:[%s2363_s15 + $0xc0] sm:$0xff] %vm1493_vm3, %v1158_v27  ;;  %1572 = vst.msk [vmem:[%s2363_s15 + $0x270] sm:$0xff] %vm1493_vm3, %v1374_v28  ;;  %v1160_v29 = vpop.f32.mrb[49].mxu0  ;;  %v1376_v30 = vpop.f32.mrb[49].mxu1 }
 0x164   : > { %v1161_v31 = vpop.f32.mrb[50].mxu0  ;;  %v1377_v32 = vpop.f32.mrb[50].mxu1 }
 0x165   : > { %1519 = vst.msk [vmem:[%s2363_s15 + $0xc8] sm:$0xff] %vm1493_vm3, %v1161_v31  ;;  %1573 = vst.msk [vmem:[%s2363_s15 + $0x278] sm:$0xff] %vm1493_vm3, %v1377_v32  ;;  %v1163_v33 = vpop.f32.mrb[51].mxu0  ;;  %v1379_v34 = vpop.f32.mrb[51].mxu1 }
 0x16a   : > { %v1166_v35 = vpop.f32.mrb[52].mxu0  ;;  %v1382_v36 = vpop.f32.mrb[52].mxu1 }
 0x16b   : > { %1520 = vst.msk [vmem:[%s2363_s15 + $0xd0] sm:$0xff] %vm1493_vm3, %v1166_v35  ;;  %1574 = vst.msk [vmem:[%s2363_s15 + $0x280] sm:$0xff] %vm1493_vm3, %v1382_v36  ;;  %v1168_v37 = vpop.f32.mrb[53].mxu0  ;;  %v1384_v38 = vpop.f32.mrb[53].mxu1 }
 0x16c   : > { %v1169_v39 = vpop.f32.mrb[54].mxu0  ;;  %v1385_v40 = vpop.f32.mrb[54].mxu1 }
 0x16d   : > { %1521 = vst.msk [vmem:[%s2363_s15 + $0xd8] sm:$0xff] %vm1493_vm3, %v1169_v39  ;;  %1575 = vst.msk [vmem:[%s2363_s15 + $0x288] sm:$0xff] %vm1493_vm3, %v1385_v40  ;;  %v1171_v41 = vpop.f32.mrb[55].mxu0  ;;  %v1387_v42 = vpop.f32.mrb[55].mxu1 }
 0x172   : > { %v1174_v43 = vpop.f32.mrb[56].mxu0  ;;  %v1390_v44 = vpop.f32.mrb[56].mxu1 }
 0x173   : > { %1522 = vst.msk [vmem:[%s2363_s15 + $0xe0] sm:$0xff] %vm1493_vm3, %v1174_v43  ;;  %1576 = vst.msk [vmem:[%s2363_s15 + $0x290] sm:$0xff] %vm1493_vm3, %v1390_v44  ;;  %v1176_v45 = vpop.f32.mrb[57].mxu0  ;;  %v1392_v46 = vpop.f32.mrb[57].mxu1 }
 0x174   : > { %v1177_v47 = vpop.f32.mrb[58].mxu0  ;;  %v1393_v48 = vpop.f32.mrb[58].mxu1 }
 0x175   : > { %1523 = vst.msk [vmem:[%s2363_s15 + $0xe8] sm:$0xff] %vm1493_vm3, %v1177_v47  ;;  %1577 = vst.msk [vmem:[%s2363_s15 + $0x298] sm:$0xff] %vm1493_vm3, %v1393_v48  ;;  %v1179_v49 = vpop.f32.mrb[59].mxu0  ;;  %v1395_v50 = vpop.f32.mrb[59].mxu1 }
 0x17a   : > { %v1182_v51 = vpop.f32.mrb[60].mxu0  ;;  %v1398_v52 = vpop.f32.mrb[60].mxu1 }
 0x17b   : > { %1524 = vst.msk [vmem:[%s2363_s15 + $0xf0] sm:$0xff] %vm1493_vm3, %v1182_v51  ;;  %1578 = vst.msk [vmem:[%s2363_s15 + $0x2a0] sm:$0xff] %vm1493_vm3, %v1398_v52  ;;  %v1184_v53 = vpop.f32.mrb[61].mxu0  ;;  %v1400_v54 = vpop.f32.mrb[61].mxu1 }
 0x17c   : > { %v1185_v55 = vpop.f32.mrb[62].mxu0  ;;  %v1401_v56 = vpop.f32.mrb[62].mxu1 }
 0x17d   : > { %1525 = vst.msk [vmem:[%s2363_s15 + $0xf8] sm:$0xff] %vm1493_vm3, %v1185_v55  ;;  %1579 = vst.msk [vmem:[%s2363_s15 + $0x2a8] sm:$0xff] %vm1493_vm3, %v1401_v56  ;;  %v1187_v57 = vpop.f32.mrb[63].mxu0  ;;  %v1403_v58 = vpop.f32.mrb[63].mxu1 }
 0x182   : > { %v1190_v59 = vpop.f32.mrb[64].mxu0  ;;  %v1406_v60 = vpop.f32.mrb[64].mxu1 }
 0x183   : > { %1526 = vst.msk [vmem:[%s2363_s15 + $0x100] sm:$0xff] %vm1493_vm3, %v1190_v59  ;;  %1580 = vst.msk [vmem:[%s2363_s15 + $0x2b0] sm:$0xff] %vm1493_vm3, %v1406_v60  ;;  %v1192_v61 = vpop.f32.mrb[65].mxu0  ;;  %v1408_v62 = vpop.f32.mrb[65].mxu1 }
 0x184   : > { %v1193_v63 = vpop.f32.mrb[66].mxu0  ;;  %v1409_v0 = vpop.f32.mrb[66].mxu1 }
 0x185   : > { %1527 = vst.msk [vmem:[%s2363_s15 + $0x108] sm:$0xff] %vm1493_vm3, %v1193_v63  ;;  %1581 = vst.msk [vmem:[%s2363_s15 + $0x2b8] sm:$0xff] %vm1493_vm3, %v1409_v0  ;;  %v1195_v1 = vpop.f32.mrb[67].mxu0  ;;  %v1411_v2 = vpop.f32.mrb[67].mxu1 }
 0x18a   : > { %v1198_v3 = vpop.f32.mrb[68].mxu0  ;;  %v1414_v4 = vpop.f32.mrb[68].mxu1 }
 0x18b   : > { %1528 = vst.msk [vmem:[%s2363_s15 + $0x110] sm:$0xff] %vm1493_vm3, %v1198_v3  ;;  %1582 = vst.msk [vmem:[%s2363_s15 + $0x2c0] sm:$0xff] %vm1493_vm3, %v1414_v4  ;;  %v1200_v5 = vpop.f32.mrb[69].mxu0  ;;  %v1416_v6 = vpop.f32.mrb[69].mxu1 }
 0x18c   : > { %v1201_v7 = vpop.f32.mrb[70].mxu0  ;;  %v1417_v8 = vpop.f32.mrb[70].mxu1 }
 0x18d   : > { %1529 = vst.msk [vmem:[%s2363_s15 + $0x118] sm:$0xff] %vm1493_vm3, %v1201_v7  ;;  %1583 = vst.msk [vmem:[%s2363_s15 + $0x2c8] sm:$0xff] %vm1493_vm3, %v1417_v8  ;;  %v1203_v9 = vpop.f32.mrb[71].mxu0  ;;  %v1419_v10 = vpop.f32.mrb[71].mxu1 }
 0x192   : > { %v1206_v11 = vpop.f32.mrb[72].mxu0  ;;  %v1422_v12 = vpop.f32.mrb[72].mxu1 }
 0x193   : > { %1530 = vst.msk [vmem:[%s2363_s15 + $0x120] sm:$0xff] %vm1493_vm3, %v1206_v11  ;;  %1584 = vst.msk [vmem:[%s2363_s15 + $0x2d0] sm:$0xff] %vm1493_vm3, %v1422_v12  ;;  %v1208_v13 = vpop.f32.mrb[73].mxu0  ;;  %v1424_v14 = vpop.f32.mrb[73].mxu1 }
 0x194   : > { %v1209_v15 = vpop.f32.mrb[74].mxu0  ;;  %v1425_v16 = vpop.f32.mrb[74].mxu1 }
 0x195   : > { %1531 = vst.msk [vmem:[%s2363_s15 + $0x128] sm:$0xff] %vm1493_vm3, %v1209_v15  ;;  %1585 = vst.msk [vmem:[%s2363_s15 + $0x2d8] sm:$0xff] %vm1493_vm3, %v1425_v16  ;;  %v1211_v17 = vpop.f32.mrb[75].mxu0  ;;  %v1427_v18 = vpop.f32.mrb[75].mxu1 }
 0x19a   : > { %v1214_v19 = vpop.f32.mrb[76].mxu0  ;;  %v1430_v20 = vpop.f32.mrb[76].mxu1 }
 0x19b   : > { %1532 = vst.msk [vmem:[%s2363_s15 + $0x130] sm:$0xff] %vm1493_vm3, %v1214_v19  ;;  %1586 = vst.msk [vmem:[%s2363_s15 + $0x2e0] sm:$0xff] %vm1493_vm3, %v1430_v20  ;;  %v1216_v21 = vpop.f32.mrb[77].mxu0  ;;  %v1432_v22 = vpop.f32.mrb[77].mxu1 }
 0x19c   : > { %v1217_v23 = vpop.f32.mrb[78].mxu0  ;;  %v1433_v24 = vpop.f32.mrb[78].mxu1 }
 0x19d   : > { %1533 = vst.msk [vmem:[%s2363_s15 + $0x138] sm:$0xff] %vm1493_vm3, %v1217_v23  ;;  %1587 = vst.msk [vmem:[%s2363_s15 + $0x2e8] sm:$0xff] %vm1493_vm3, %v1433_v24  ;;  %v1219_v25 = vpop.f32.mrb[79].mxu0  ;;  %v1435_v26 = vpop.f32.mrb[79].mxu1 }
 0x1a2   : > { %v1222_v27 = vpop.f32.mrb[80].mxu0  ;;  %v1438_v28 = vpop.f32.mrb[80].mxu1 }
 0x1a3   : > { %1534 = vst.msk [vmem:[%s2363_s15 + $0x140] sm:$0xff] %vm1493_vm3, %v1222_v27  ;;  %1588 = vst.msk [vmem:[%s2363_s15 + $0x2f0] sm:$0xff] %vm1493_vm3, %v1438_v28  ;;  %v1224_v29 = vpop.f32.mrb[81].mxu0  ;;  %v1440_v30 = vpop.f32.mrb[81].mxu1 }
 0x1a4   : > { %v1225_v31 = vpop.f32.mrb[82].mxu0  ;;  %v1441_v32 = vpop.f32.mrb[82].mxu1 }
 0x1a5   : > { %1535 = vst.msk [vmem:[%s2363_s15 + $0x148] sm:$0xff] %vm1493_vm3, %v1225_v31  ;;  %1589 = vst.msk [vmem:[%s2363_s15 + $0x2f8] sm:$0xff] %vm1493_vm3, %v1441_v32  ;;  %v1227_v33 = vpop.f32.mrb[83].mxu0  ;;  %v1443_v34 = vpop.f32.mrb[83].mxu1 }
 0x1aa   : > { %v1230_v35 = vpop.f32.mrb[84].mxu0  ;;  %v1446_v36 = vpop.f32.mrb[84].mxu1 }
 0x1ab   : > { %1536 = vst.msk [vmem:[%s2363_s15 + $0x150] sm:$0xff] %vm1493_vm3, %v1230_v35  ;;  %1590 = vst.msk [vmem:[%s2363_s15 + $0x300] sm:$0xff] %vm1493_vm3, %v1446_v36  ;;  %v1232_v37 = vpop.f32.mrb[85].mxu0  ;;  %v1448_v38 = vpop.f32.mrb[85].mxu1 }
 0x1ac   : > { %v1233_v39 = vpop.f32.mrb[86].mxu0  ;;  %v1449_v40 = vpop.f32.mrb[86].mxu1 }
 0x1ad   : > { %1537 = vst.msk [vmem:[%s2363_s15 + $0x158] sm:$0xff] %vm1493_vm3, %v1233_v39  ;;  %1591 = vst.msk [vmem:[%s2363_s15 + $0x308] sm:$0xff] %vm1493_vm3, %v1449_v40  ;;  %v1235_v41 = vpop.f32.mrb[87].mxu0  ;;  %v1451_v42 = vpop.f32.mrb[87].mxu1 }
 0x1b2   : > { %v1238_v43 = vpop.f32.mrb[88].mxu0  ;;  %v1454_v44 = vpop.f32.mrb[88].mxu1 }
 0x1b3   : > { %1538 = vst.msk [vmem:[%s2363_s15 + $0x160] sm:$0xff] %vm1493_vm3, %v1238_v43  ;;  %1592 = vst.msk [vmem:[%s2363_s15 + $0x310] sm:$0xff] %vm1493_vm3, %v1454_v44  ;;  %v1240_v45 = vpop.f32.mrb[89].mxu0  ;;  %v1456_v46 = vpop.f32.mrb[89].mxu1 }
 0x1b4   : > { %v1241_v47 = vpop.f32.mrb[90].mxu0  ;;  %v1457_v48 = vpop.f32.mrb[90].mxu1 }
 0x1b5   : > { %1539 = vst.msk [vmem:[%s2363_s15 + $0x168] sm:$0xff] %vm1493_vm3, %v1241_v47  ;;  %1593 = vst.msk [vmem:[%s2363_s15 + $0x318] sm:$0xff] %vm1493_vm3, %v1457_v48  ;;  %v1243_v49 = vpop.f32.mrb[91].mxu0  ;;  %v1459_v50 = vpop.f32.mrb[91].mxu1 }
 0x1ba   : > { %v1246_v51 = vpop.f32.mrb[92].mxu0  ;;  %v1462_v52 = vpop.f32.mrb[92].mxu1 }
 0x1bb   : > { %1540 = vst.msk [vmem:[%s2363_s15 + $0x170] sm:$0xff] %vm1493_vm3, %v1246_v51  ;;  %1594 = vst.msk [vmem:[%s2363_s15 + $0x320] sm:$0xff] %vm1493_vm3, %v1462_v52  ;;  %v1248_v53 = vpop.f32.mrb[93].mxu0  ;;  %v1464_v54 = vpop.f32.mrb[93].mxu1 }
 0x1bc   : > { %v1249_v55 = vpop.f32.mrb[94].mxu0  ;;  %v1465_v56 = vpop.f32.mrb[94].mxu1 }
 0x1bd   : > { %1541 = vst.msk [vmem:[%s2363_s15 + $0x178] sm:$0xff] %vm1493_vm3, %v1249_v55  ;;  %1595 = vst.msk [vmem:[%s2363_s15 + $0x328] sm:$0xff] %vm1493_vm3, %v1465_v56  ;;  %v1251_v57 = vpop.f32.mrb[95].mxu0  ;;  %v1467_v58 = vpop.f32.mrb[95].mxu1 }
 0x1c2   : > { %v1254_v59 = vpop.f32.mrb[96].mxu0  ;;  %v1470_v60 = vpop.f32.mrb[96].mxu1 }
 0x1c3   : > { %1542 = vst.msk [vmem:[%s2363_s15 + $0x180] sm:$0xff] %vm1493_vm3, %v1254_v59  ;;  %1596 = vst.msk [vmem:[%s2363_s15 + $0x330] sm:$0xff] %vm1493_vm3, %v1470_v60  ;;  %v1256_v61 = vpop.f32.mrb[97].mxu0  ;;  %v1472_v62 = vpop.f32.mrb[97].mxu1 }
 0x1c4   : > { %v1257_v63 = vpop.f32.mrb[98].mxu0  ;;  %v1473_v0 = vpop.f32.mrb[98].mxu1 }
 0x1c5   : > { %1543 = vst.msk [vmem:[%s2363_s15 + $0x188] sm:$0xff] %vm1493_vm3, %v1257_v63  ;;  %1597 = vst.msk [vmem:[%s2363_s15 + $0x338] sm:$0xff] %vm1493_vm3, %v1473_v0  ;;  %v1259_v1 = vpop.f32.mrb[99].mxu0  ;;  %v1475_v2 = vpop.f32.mrb[99].mxu1 }
 0x1ca   : > { %v1262_v3 = vpop.f32.mrb[100].mxu0  ;;  %v1478_v4 = vpop.f32.mrb[100].mxu1 }
 0x1cb   : > { %1544 = vst.msk [vmem:[%s2363_s15 + $0x190] sm:$0xff] %vm1493_vm3, %v1262_v3  ;;  %1598 = vst.msk [vmem:[%s2363_s15 + $0x340] sm:$0xff] %vm1493_vm3, %v1478_v4  ;;  %v1264_v5 = vpop.f32.mrb[101].mxu0  ;;  %v1480_v6 = vpop.f32.mrb[101].mxu1 }
 0x1cc   : > { %v1265_v7 = vpop.f32.mrb[102].mxu0  ;;  %v1481_v8 = vpop.f32.mrb[102].mxu1 }
 0x1cd   : > { %1545 = vst.msk [vmem:[%s2363_s15 + $0x198] sm:$0xff] %vm1493_vm3, %v1265_v7  ;;  %1599 = vst.msk [vmem:[%s2363_s15 + $0x348] sm:$0xff] %vm1493_vm3, %v1481_v8  ;;  %v1267_v9 = vpop.f32.mrb[103].mxu0  ;;  %v1483_v10 = vpop.f32.mrb[103].mxu1 }
 0x1d2   : > { %v1270_v11 = vpop.f32.mrb[104].mxu0  ;;  %v1486_v12 = vpop.f32.mrb[104].mxu1 }
 0x1d3   : > { %1546 = vst.msk [vmem:[%s2363_s15 + $0x1a0] sm:$0xff] %vm1493_vm3, %v1270_v11  ;;  %1600 = vst.msk [vmem:[%s2363_s15 + $0x350] sm:$0xff] %vm1493_vm3, %v1486_v12  ;;  %v1272_v13 = vpop.f32.mrb[105].mxu0  ;;  %v1488_v14 = vpop.f32.mrb[105].mxu1 }
 0x1d4   : > { %v1273_v15 = vpop.f32.mrb[106].mxu0  ;;  %v1489_v16 = vpop.f32.mrb[106].mxu1 }
 0x1d5   : > { %1547 = vst.msk [vmem:[%s2363_s15 + $0x1a8] sm:$0xff] %vm1493_vm3, %v1273_v15  ;;  %1601 = vst.msk [vmem:[%s2363_s15 + $0x358] sm:$0xff] %vm1493_vm3, %v1489_v16  ;;  %v1275_v17 = vpop.f32.mrb[107].mxu0  ;;  %v1491_v18 = vpop.f32.mrb[107].mxu1 }
 0x1d6 PF: > { %s12_s11 = sadd.s32 1, %s2116_s11   ;;  %s2593_s9 = smov %s2112_s10 }
 0x1d7   : > { %p9_p5 = scmp.ge.s32.totalorder %s12_s11, 14   ;;  %s2594_s10 = smov %s2596_s12 }
 0x1d9   :  { %11 = sbr.rel (!%p9_p5) target bundleno = 2 (0x2), region = 61 }

</bundles_post_ra>
